<compile_context>
chip_gen: v7x
topology: tpu7x:2x2x1
jax: 0.10.0
libtpu: 0.0.40
codegen_flags: <defaults>
</compile_context>

<pallas_src>
import jax
import jax.numpy as jnp
from jax.experimental import pallas as pl
from jax.experimental.pallas import tpu as pltpu


def _avg_consensus_kernel(x_ref, o_ref):
    # x_ref: (BN, T, TC) VMEM tile; o_ref: (BN, TC) VMEM tile.
    t = x_ref.shape[1]  # static Python int
    x = x_ref[...].astype(jnp.float32)  # no-op for f32 inputs
    acc = jnp.sum(x, axis=1)            # (BN, TC) f32 accumulator (VPU adds)
    o_ref[...] = (acc * (1.0 / t)).astype(o_ref.dtype)


def _choose_tiles(N, T, C, itemsize):
    """Pick (BN, TC) so the input tile is ~1-4 MiB, lane/sublane dense, and
    safe under the smallest scoped-VMEM budget (v5e 16 MiB) with double
    buffering. Works on v5e/v6e/v7x without re-tuning."""
    target_bytes = 2 * 1024 * 1024  # ~2 MiB per input buffer

    # C tile: multiple of 128 (lane dim) when possible, else full C.
    if C % 128 == 0:
        tc = min(C, 2048)
    else:
        tc = C

    # Batch rows per step: fill the byte target; prefer multiples of 8 for
    # dense (>= 8 sublane) output stores; never exceed N.
    bn = max(1, target_bytes // max(1, T * tc * itemsize))
    bn = min(bn, N)
    if bn >= 8:
        bn = (bn // 8) * 8
    return bn, tc


def consensus_module(x, consensus_type="avg", dim=1):
    """JAX/Pallas equivalent of ConsensusModule.forward.

    x: jnp.ndarray of shape (N, T, C); dim must be 1 (matches TSN usage).
    """
    if consensus_type == "rnn":
        consensus_type = "identity"

    if consensus_type == "identity":
        # Identity: returning the (immutable) input is semantically identical
        # to PyTorch's passthrough and costs zero HBM traffic.
        return x

    if consensus_type != "avg":
        # Matches PyTorch: unknown consensus types return None.
        return None

    assert dim == 1, "only dim=1 (segment axis) is supported, as in TSN usage"
    N, T, C = x.shape
    bn, tc = _choose_tiles(N, T, C, jnp.dtype(x.dtype).itemsize)

    grid = (pl.cdiv(N, bn), pl.cdiv(C, tc))

    out_2d = pl.pallas_call(
        _avg_consensus_kernel,
        out_shape=jax.ShapeDtypeStruct((N, C), x.dtype),
        grid=grid,
        in_specs=[pl.BlockSpec((bn, T, tc), lambda i, j: (i, 0, j))],
        out_specs=pl.BlockSpec((bn, tc), lambda i, j: (i, j)),
        compiler_params=pltpu.CompilerParams(
            dimension_semantics=("parallel", "parallel"),
            vmem_limit_bytes=32 * 1024 * 1024,
        ),
    )(x)

    # keepdims reshape in the wrapper (free layout plumbing, keeps the kernel
    # output slab lane/sublane dense).
    return out_2d.reshape(N, 1, C)


if __name__ == "__main__":
    key = jax.random.PRNGKey(0)
    N, T, C = 2, 8, 128  # batch=2, segments=8, num_classes=128
    x = jax.random.normal(key, (N, T, C), dtype=jnp.float32)

    # 'avg' consensus (hot path)
    out_avg = consensus_module(x, consensus_type="avg", dim=1)
    out_avg = jax.block_until_ready(out_avg)
    ref_avg = jnp.mean(x, axis=1, keepdims=True)
    assert out_avg.shape == (N, 1, C)
    assert jnp.allclose(out_avg, ref_avg, atol=1e-5, rtol=1e-5)

    # 'identity' consensus (and 'rnn' -> identity): pure passthrough
    out_id = consensus_module(x, consensus_type="identity", dim=1)
    out_id = jax.block_until_ready(out_id)
    assert out_id.shape == x.shape
    assert jnp.allclose(out_id, x)

    # 'rnn' maps to identity
    out_rnn = consensus_module(x, consensus_type="rnn", dim=1)
    assert jnp.allclose(jax.block_until_ready(out_rnn), x)

    # unknown type -> None (matches PyTorch)
    assert consensus_module(x, consensus_type="max", dim=1) is None

    print("KERNEL_OK")
</pallas_src>

<mosaic_0001>
module attributes {stable_mosaic.version = 11 : i64} {
  func.func @_avg_consensus_kernel(%arg0: i32, %arg1: i32, %arg2: memref<2x8x128xf32, #tpu.memory_space<vmem>>, %arg3: memref<2x128xf32, #tpu.memory_space<vmem>>) attributes {dimension_semantics = [#tpu.dimension_semantics<parallel>, #tpu.dimension_semantics<parallel>], iteration_bounds = array<i64: 1, 1>, scalar_prefetch = 0 : i64, scratch_operands = 0 : i64, tpu.core_type = #tpu.core_type<tc>, window_params = [{transform_indices = @transform_0, window_bounds = array<i64: 2, 8, 128>}, {transform_indices = @transform_1, window_bounds = array<i64: 2, 128>}]} {
    %c0 = arith.constant 0 : index
    %c0_0 = arith.constant 0 : index
    %c0_1 = arith.constant 0 : index
    %0 = vector.load %arg2[%c0, %c0_0, %c0_1] : memref<2x8x128xf32, #tpu.memory_space<vmem>>, vector<2x8x128xf32>
    %cst = arith.constant dense<0.000000e+00> : vector<2x128xf32>
    %1 = vector.multi_reduction <add>, %0, %cst [1] : vector<2x8x128xf32> to vector<2x128xf32>
    %cst_2 = arith.constant 1.250000e-01 : f32
    %2 = vector.broadcast %cst_2 : f32 to vector<2x128xf32>
    %3 = arith.mulf %1, %2 : vector<2x128xf32>
    %c0_3 = arith.constant 0 : index
    %c0_4 = arith.constant 0 : index
    %4 = vector.load %arg3[%c0_3, %c0_4] : memref<2x128xf32, #tpu.memory_space<vmem>>, vector<2x128xf32>
    tpu.vector_store %arg3[%c0_3, %c0_4], %3 {strides = array<i32>} : memref<2x128xf32, #tpu.memory_space<vmem>>, vector<2x128xf32>,
    return
  }
  func.func @transform_0(%arg0: i32, %arg1: i32) -> (i32, i32, i32) {
    %c0_i32 = arith.constant 0 : i32
    %c0_i32_0 = arith.constant 0 : i32
    return %arg0, %c0_i32, %arg1 : i32, i32, i32
  }
  func.func @transform_1(%arg0: i32, %arg1: i32) -> (i32, i32) {
    %c0_i32 = arith.constant 0 : i32
    return %arg0, %arg1 : i32, i32
  }
}

</mosaic_0001>

<bundles_post_ra>
// kernel: tpu_custom_call.1
= control target key start
LH: loop header
LB: loop body
LE: loop exit
PB: predicated region body
PF: predicated region fallthrough
CT: control target
= control target key end

     0   :  { %6 = vsyncpa [#allocation3], 0  ;;  %s150_s0 = inlined_call_operand.hbm [shape: f32[2,8,128], index: 0, kind: input, shape index: {}]   ;;  %s151_s1 = inlined_call_operand.hbm [shape: f32[2,128], index: 1, kind: output, shape index: {}]  }
   0x1   :  { %7 = vsyncpa [#allocation4], 0  ;;  %s112_s6 = smov [#allocation2]   ;;  %s64_s10 = scalar_lea.hbm %s150_s0, 256 }
   0x2   :  { %s13_s7 = sshll.u32 %s112_s6, 4  ;;  %p65_p0 = scmp.ne.s32.totalorder %s150_s0, %s64_s10  ;;  %s14_s7 = int_to_ptr.vmem [resolvable:$true] %s13_s7 }
   0x3   :  { %p68_p1 = scmp.lt.u32.totalorder %s64_s10, %s150_s0 }
   0x5   :  { %p70_p2 = pnand %p68_p1, %p65_p0 }
   0x7   :  { %73 = shalt.err (!%p70_p2)
}
   0x8   :  { %s74_s15 = scalar_lea.vmem %s14_s7, 256  ;;  %p79_p4 = scmp.lt.s32.totalorder %s14_s7, %s14_s7 }
   0x9   :  { %p75_p3 = scmp.ne.s32.totalorder %s14_s7, %s74_s15  ;;  %p80_p5 = scmp.lt.s32.totalorder %s74_s15, %s74_s15 }
   0xb   :  { %p81_p6 = por %p80_p5, %p79_p4 }
   0xd   :  { %p82_p7 = pnand %p81_p6, %p75_p3 }
   0xf   :  { %85 = shalt.err (!%p82_p7)
}
  0x10   :  { %s113_s16 = smov 128   ;;  %s114_s17 = smov 8  }
  0x11   :  { %19 = dma.hbm_to_vmem [thread:$0]  %s150_s0, 256, %s14_s7, [#allocation3], %s113_s16, %s113_s16, %s114_s17  }
  0x12   :  { %108 = dma.done.wait [#allocation3], 256  }
  0x13   :  { %109 = vsyncadd [#allocation3], 4294967040  ;;  %v23_v0 = vld [vmem:[#allocation2] sm:$0xff]  ;;  %v24_v1 = vld [vmem:[#allocation2 + $0x8] sm:$0xff]  ;;  %s115_s20 = smov [#allocation5]   ;;  %vm41_vm0 = vcmask 1041409  }
  0x14   :  { %v25_v2 = vrot.slane %v23_v0, 4  ;;  %v31_v3 = vrot.slane %v24_v1, 4  ;;  %s51_s21 = sshll.u32 %s115_s20, 4  ;;  %s52_s21 = int_to_ptr.vmem [resolvable:$true] %s51_s21 }
  0x15   :  { %s86_s0 = scalar_lea.vmem %s52_s21, 32  ;;  %p91_p9 = scmp.lt.s32.totalorder %s52_s21, %s52_s21 }
  0x16   :  { %v26_v4 = vadd.f32 %v25_v2, %v23_v0  ;;  %v32_v5 = vadd.f32 %v31_v3, %v24_v1  ;;  %p87_p8 = scmp.ne.s32.totalorder %s52_s21, %s86_s0  ;;  %p92_p10 = scmp.lt.s32.totalorder %s86_s0, %s86_s0 }
  0x18   :  { %v27_v6 = vrot.slane %v26_v4, 2  ;;  %v33_v7 = vrot.slane %v32_v5, 2  ;;  %p93_p11 = por %p92_p10, %p91_p9 }
  0x1a   :  { %v28_v8 = vadd.f32 %v27_v6, %v26_v4  ;;  %v34_v9 = vadd.f32 %v33_v7, %v32_v5  ;;  %p94_p12 = pnand %p93_p11, %p87_p8 }
  0x1c   :  { %v29_v10 = vrot.slane %v28_v8, 1  ;;  %v35_v11 = vrot.slane %v34_v9, 1 }
  0x1e   :  { %v30_v12 = vadd.f32 %v29_v10, %v28_v8  ;;  %v36_v13 = vadd.f32 %v35_v11, %v34_v9 }
  0x20   :  { %v37_v14 = vmul.f32 0.125, %v30_v12  ;;  %v38_v15 = vmul.f32 0.125, %v36_v13 }
  0x22   :  { %v42_v16 = vsel %vm41_vm0, %v38_v15, %v37_v14 }
  0x23   :  { %44 = vst [vmem:[#allocation5] sm:$0x3] %v42_v16 }
  0x24   :  { %97 = shalt.err (!%p94_p12)
}
  0x25   :  { %s98_s24 = scalar_lea.hbm %s151_s1, 32 }
  0x26   :  { %p99_p13 = scmp.ne.s32.totalorder %s151_s1, %s98_s24  ;;  %p102_p0 = scmp.lt.u32.totalorder %s98_s24, %s151_s1 }
  0x28   :  { %p104_p1 = pnand %p102_p0, %p99_p13 }
  0x2a   :  { %107 = shalt.err (!%p104_p1)
}
  0x2b   :  { %54 = dma.vmem_to_hbm [thread:$0]  %s52_s21, 32, %s151_s1, [#allocation4]  }
  0x2c   :  { %110 = dma.done.wait [#allocation4], 32  }
  0x2d   :  { %111 = vsyncadd [#allocation4], 4294967264 }
  0x2e   :  { %58 = vsyncpa [#allocation3], 1 }
  0x2f   :  { %59 = vsyncpa [#allocation4], 1 }

</bundles_post_ra>
